<compile_context>
chip_gen: v7x
topology: tpu7x:2x2x1
jax: 0.10.0
libtpu: 0.0.40
codegen_flags: <defaults>
</compile_context>

<pallas_src>
import functools

import jax
import jax.numpy as jnp
from jax import lax
from jax.experimental import pallas as pl
from jax.experimental.pallas import tpu as pltpu


def _upsample1d_kernel(x_ref, xp_ref, xn_ref, w_ref, b_ref, o_ref, *, L):
    # x_ref : (1, TL, Cp)    current length-tile, channels-last
    # xp_ref: (1, hb, Cp)    hb-row block whose LAST row is x[tile_start - 1] (valid iff tile_start > 0)
    # xn_ref: (1, hb, Cp)    hb-row block whose FIRST row is x[tile_end]      (valid iff tile_end  < L)
    # w_ref : (Cp, 4*Cp)     [w0 | w1 | w2 | w3], wk = weight[:, :, k] (Cin, Cout), zero-padded
    # b_ref : (1, Cp)
    # o_ref : (1, TL, 2*Cp)  columns [0:Cp] = even outputs, [Cp:2Cp] = odd outputs
    l = pl.program_id(1)
    TL, Cp = x_ref.shape[1], x_ref.shape[2]
    hb = xp_ref.shape[1]

    x = x_ref[0]                                   # (TL, Cp)
    w = w_ref[...]                                 # (Cp, 4Cp)
    b = b_ref[...]                                 # (1, Cp)

    # One MXU matmul computes all four taps for every row of the tile.
    z = jnp.dot(x, w, preferred_element_type=jnp.float32)          # (TL, 4Cp)
    z0 = z[:, 0 * Cp:1 * Cp]        # x[i] @ w0
    z1 = z[:, 1 * Cp:2 * Cp]        # x[i] @ w1
    z2 = z[:, 2 * Cp:3 * Cp]        # x[i] @ w2
    z3 = z[:, 3 * Cp:4 * Cp]        # x[i] @ w3

    # Halo contributions (one row each, tiny matmuls).
    ph = jnp.dot(xp_ref[0, hb - 1:hb, :], w[:, 3 * Cp:4 * Cp],
                 preferred_element_type=jnp.float32)                # x[start-1] @ w3
    nh = jnp.dot(xn_ref[0, 0:1, :], w[:, 0 * Cp:1 * Cp],
                 preferred_element_type=jnp.float32)                # x[end]     @ w0

    # Shift so that row i holds x[i-1]@w3 / x[i+1]@w0.
    z3_shift = jnp.concatenate([ph, z3[:TL - 1, :]], axis=0)        # (TL, Cp)
    z0_shift = jnp.concatenate([z0[1:, :], nh], axis=0)             # (TL, Cp)

    # Global row indices for boundary masking (x[-1] == 0, x[L] == 0); jnp.where also
    # keeps any unspecified padding of partial edge blocks from leaking into valid rows.
    rows = l * TL + lax.broadcasted_iota(jnp.int32, (TL, 1), 0)
    prev_term = jnp.where(rows >= 1, z3_shift, 0.0)
    next_term = jnp.where(rows <= L - 2, z0_shift, 0.0)

    even = z1 + prev_term + b
    odd = z2 + next_term + b

    o_ref[0, :, 0:Cp] = even.astype(o_ref.dtype)
    o_ref[0, :, Cp:2 * Cp] = odd.astype(o_ref.dtype)


def upsample1d(x_ncl, weight, bias, *, tl_max=512):
    """ConvTranspose1d(dim, dim, 4, 2, 1) forward.

    Args:
      x_ncl:  (B, C, L)  NCL, like PyTorch.
      weight: (C, C, 4)  PyTorch ConvTranspose1d weight (Cin, Cout, K).
      bias:   (C,)
    Returns:
      (B, C, 2*L), same dtype as x_ncl.
    """
    B, C, L = x_ncl.shape
    assert weight.shape == (C, C, 4) and bias.shape == (C,)
    assert tl_max % 8 == 0

    # Lane-dense channel axis: pad channels up to a multiple of 128.
    Cp = ((C + 127) // 128) * 128
    x_lc = jnp.transpose(x_ncl, (0, 2, 1))                          # (B, L, C); pad fuses with this
    if Cp != C:
        x_lc = jnp.pad(x_lc, ((0, 0), (0, 0), (0, Cp - C)))
        weight = jnp.pad(weight, ((0, Cp - C), (0, Cp - C), (0, 0)))
        bias = jnp.pad(bias, (0, Cp - C))
    w_all = jnp.transpose(weight, (0, 2, 1)).reshape(Cp, 4 * Cp)    # [w0|w1|w2|w3]
    b_2d = bias.reshape(1, Cp)

    # Length tiling: TL rows per grid step, plus an hb-row halo block on each side.
    TL = L if L <= tl_max else tl_max
    nL = pl.cdiv(L, TL)
    hb = min(8, L)
    nbh = pl.cdiv(L, hb)            # number of hb-row blocks along L
    thb = TL // hb                  # exact when nL > 1 (both are multiples of 8)

    kernel = functools.partial(_upsample1d_kernel, L=L)

    out = pl.pallas_call(
        kernel,
        out_shape=jax.ShapeDtypeStruct((B, L, 2 * Cp), x_ncl.dtype),
        grid_spec=pltpu.PrefetchScalarGridSpec(
            num_scalar_prefetch=0,
            grid=(B, nL),
            in_specs=[
                pl.BlockSpec((1, TL, Cp), lambda b, l: (b, l, 0)),
                pl.BlockSpec((1, hb, Cp),
                             lambda b, l: (b, jnp.maximum(l * thb - 1, 0), 0)),
                pl.BlockSpec((1, hb, Cp),
                             lambda b, l: (b, jnp.minimum((l + 1) * thb, nbh - 1), 0)),
                pl.BlockSpec((Cp, 4 * Cp), lambda b, l: (0, 0)),
                pl.BlockSpec((1, Cp), lambda b, l: (0, 0)),
            ],
            out_specs=pl.BlockSpec((1, TL, 2 * Cp), lambda b, l: (b, l, 0)),
        ),
        compiler_params=pltpu.CompilerParams(
            dimension_semantics=("parallel", "parallel"),
            vmem_limit_bytes=32 * 1024 * 1024,
        ),
    )(x_lc, x_lc, x_lc, w_all, b_2d)

    # (B, L, 2*Cp) -> (B, 2L, Cp) is a free contiguous reshape (interleave done in-kernel).
    y_lc = out.reshape(B, 2 * L, Cp)[:, :, :C]
    return jnp.transpose(y_lc, (0, 2, 1))                           # (B, C, 2L)


def _reference_upsample1d(x_ncl, weight, bias):
    """Pure-JAX reference: transposed conv via lhs-dilated regular conv."""
    w_f = jnp.flip(jnp.transpose(weight, (1, 0, 2)), axis=2)        # OIH, flipped taps
    y = lax.conv_general_dilated(
        x_ncl, w_f,
        window_strides=(1,),
        padding=[(2, 2)],                 # K - 1 - padding = 4 - 1 - 1 = 2
        lhs_dilation=(2,),                # stride of the transposed conv
        dimension_numbers=("NCH", "OIH", "NCH"),
    )
    return y + bias[None, :, None]


if __name__ == "__main__":
    key = jax.random.PRNGKey(0)

    # Small shape matching the module spec (batch=2, dim=4, length=16).
    B, dim, L = 2, 4, 16
    kx, kw, kb, k2 = jax.random.split(key, 4)
    x = jax.random.normal(kx, (B, dim, L), dtype=jnp.float32)
    weight = jax.random.normal(kw, (dim, dim, 4), dtype=jnp.float32) * 0.1
    bias = jax.random.normal(kb, (dim,), dtype=jnp.float32) * 0.1

    y = jax.block_until_ready(upsample1d(x, weight, bias))
    assert y.shape == (B, dim, 2 * L), y.shape
    y_ref = jax.block_until_ready(_reference_upsample1d(x, weight, bias))
    assert jnp.allclose(y, y_ref, atol=1e-4, rtol=1e-4), "mismatch vs reference (small)"

    # Larger shape exercising the multi-tile / halo / partial-last-tile path.
    B2, dim2, L2 = 1, 64, 1040
    kx2, kw2, kb2 = jax.random.split(k2, 3)
    x2 = jax.random.normal(kx2, (B2, dim2, L2), dtype=jnp.float32)
    weight2 = jax.random.normal(kw2, (dim2, dim2, 4), dtype=jnp.float32) * 0.05
    bias2 = jax.random.normal(kb2, (dim2,), dtype=jnp.float32) * 0.05

    y2 = jax.block_until_ready(upsample1d(x2, weight2, bias2))
    assert y2.shape == (B2, dim2, 2 * L2), y2.shape
    y2_ref = jax.block_until_ready(_reference_upsample1d(x2, weight2, bias2))
    assert jnp.allclose(y2, y2_ref, atol=1e-4, rtol=1e-4), "mismatch vs reference (tiled)"

    print("KERNEL_OK")
</pallas_src>

<mosaic_0001>
module attributes {stable_mosaic.version = 11 : i64} {
  func.func @_upsample1d_kernel(%arg0: i32, %arg1: i32, %arg2: memref<1x16x128xf32, #tpu.memory_space<vmem>>, %arg3: memref<1x8x128xf32, #tpu.memory_space<vmem>>, %arg4: memref<1x8x128xf32, #tpu.memory_space<vmem>>, %arg5: memref<128x512xf32, #tpu.memory_space<vmem>>, %arg6: memref<1x128xf32, #tpu.memory_space<vmem>>, %arg7: memref<1x16x256xf32, #tpu.memory_space<vmem>>) attributes {dimension_semantics = [#tpu.dimension_semantics<parallel>, #tpu.dimension_semantics<parallel>], iteration_bounds = array<i64: 2, 1>, scalar_prefetch = 0 : i64, scratch_operands = 0 : i64, tpu.core_type = #tpu.core_type<tc>, window_params = [{transform_indices = @transform_0, window_bounds = array<i64: 1, 16, 128>}, {transform_indices = @transform_1, window_bounds = array<i64: 1, 8, 128>}, {transform_indices = @transform_2, window_bounds = array<i64: 1, 8, 128>}, {pipeline_mode = #tpu.pipeline_mode<synchronous>, transform_indices = @transform_3, window_bounds = array<i64: 128, 512>}, {pipeline_mode = #tpu.pipeline_mode<synchronous>, transform_indices = @transform_4, window_bounds = array<i64: 1, 128>}, {transform_indices = @transform_5, window_bounds = array<i64: 1, 16, 256>}]} {
    %c0 = arith.constant 0 : index
    %c0_0 = arith.constant 0 : index
    %c0_1 = arith.constant 0 : index
    %0 = vector.load %arg2[%c0, %c0_0, %c0_1] : memref<1x16x128xf32, #tpu.memory_space<vmem>>, vector<1x16x128xf32>
    %1 = vector.shape_cast %0 : vector<1x16x128xf32> to vector<16x128xf32>
    %c0_2 = arith.constant 0 : index
    %c0_3 = arith.constant 0 : index
    %2 = vector.load %arg5[%c0_2, %c0_3] : memref<128x512xf32, #tpu.memory_space<vmem>>, vector<128x512xf32>
    %c0_4 = arith.constant 0 : index
    %c0_5 = arith.constant 0 : index
    %3 = vector.load %arg6[%c0_4, %c0_5] : memref<1x128xf32, #tpu.memory_space<vmem>>, vector<1x128xf32>
    %cst = arith.constant dense<0.000000e+00> : vector<16x512xf32>
    %4 = tpu.matmul %1, %2, %cst {dimension_numbers = #tpu.dot_dimension_numbers<[1], [0], [0], [1], [0, 0, 1, 1], [], []>} : vector<16x128xf32>, vector<128x512xf32>, vector<16x512xf32> -> vector<16x512xf32>
    %5 = vector.extract_strided_slice %4 {offsets = [0, 0], sizes = [16, 128], strides = [1, 1]} : vector<16x512xf32> to vector<16x128xf32>
    %6 = vector.extract_strided_slice %4 {offsets = [0, 128], sizes = [16, 128], strides = [1, 1]} : vector<16x512xf32> to vector<16x128xf32>
    %7 = vector.extract_strided_slice %4 {offsets = [0, 256], sizes = [16, 128], strides = [1, 1]} : vector<16x512xf32> to vector<16x128xf32>
    %8 = vector.extract_strided_slice %4 {offsets = [0, 384], sizes = [16, 128], strides = [1, 1]} : vector<16x512xf32> to vector<16x128xf32>
    %c0_6 = arith.constant 0 : index
    %c7 = arith.constant 7 : index
    %c0_7 = arith.constant 0 : index
    %9 = vector.load %arg3[%c0_6, %c7, %c0_7] : memref<1x8x128xf32, #tpu.memory_space<vmem>>, vector<1x1x128xf32>
    %10 = vector.shape_cast %9 : vector<1x1x128xf32> to vector<1x128xf32>
    %11 = vector.extract_strided_slice %2 {offsets = [0, 384], sizes = [128, 128], strides = [1, 1]} : vector<128x512xf32> to vector<128x128xf32>
    %cst_8 = arith.constant dense<0.000000e+00> : vector<1x128xf32>
    %12 = tpu.matmul %10, %11, %cst_8 {dimension_numbers = #tpu.dot_dimension_numbers<[1], [0], [0], [1], [0, 0, 1, 1], [], []>} : vector<1x128xf32>, vector<128x128xf32>, vector<1x128xf32> -> vector<1x128xf32>
    %c0_9 = arith.constant 0 : index
    %c0_10 = arith.constant 0 : index
    %c0_11 = arith.constant 0 : index
    %13 = vector.load %arg4[%c0_9, %c0_10, %c0_11] : memref<1x8x128xf32, #tpu.memory_space<vmem>>, vector<1x1x128xf32>
    %14 = vector.shape_cast %13 : vector<1x1x128xf32> to vector<1x128xf32>
    %15 = vector.extract_strided_slice %2 {offsets = [0, 0], sizes = [128, 128], strides = [1, 1]} : vector<128x512xf32> to vector<128x128xf32>
    %cst_12 = arith.constant dense<0.000000e+00> : vector<1x128xf32>
    %16 = tpu.matmul %14, %15, %cst_12 {dimension_numbers = #tpu.dot_dimension_numbers<[1], [0], [0], [1], [0, 0, 1, 1], [], []>} : vector<1x128xf32>, vector<128x128xf32>, vector<1x128xf32> -> vector<1x128xf32>
    %17 = vector.extract_strided_slice %8 {offsets = [0, 0], sizes = [15, 128], strides = [1, 1]} : vector<16x128xf32> to vector<15x128xf32>
    %18 = tpu.concatenate %12, %17 in 0 : vector<1x128xf32>, vector<15x128xf32> -> vector<16x128xf32>
    %19 = vector.extract_strided_slice %5 {offsets = [1, 0], sizes = [15, 128], strides = [1, 1]} : vector<16x128xf32> to vector<15x128xf32>
    %20 = tpu.concatenate %19, %16 in 0 : vector<15x128xf32>, vector<1x128xf32> -> vector<16x128xf32>
    %c16_i32 = arith.constant 16 : i32
    %21 = arith.muli %arg1, %c16_i32 : i32
    %22 = tpu.iota {dimensions = array<i32: 0>} : vector<16x1xi32>
    %23 = vector.broadcast %21 : i32 to vector<16x1xi32>
    %24 = arith.addi %23, %22 : vector<16x1xi32>
    %c1_i32 = arith.constant 1 : i32
    %25 = vector.broadcast %c1_i32 : i32 to vector<16x1xi32>
    %26 = arith.cmpi sge, %24, %25 : vector<16x1xi32>
    %cst_13 = arith.constant 0.000000e+00 : f32
    %27 = vector.shape_cast %26 : vector<16x1xi1> to vector<16x1xi1>
    %28 = vector.broadcast %27 : vector<16x1xi1> to vector<16x128xi1>
    %29 = vector.broadcast %cst_13 : f32 to vector<16x128xf32>
    %30 = arith.select %28, %18, %29 : vector<16x128xi1>, vector<16x128xf32>
    %c14_i32 = arith.constant 14 : i32
    %31 = vector.broadcast %c14_i32 : i32 to vector<16x1xi32>
    %32 = arith.cmpi sle, %24, %31 : vector<16x1xi32>
    %cst_14 = arith.constant 0.000000e+00 : f32
    %33 = vector.shape_cast %32 : vector<16x1xi1> to vector<16x1xi1>
    %34 = vector.broadcast %33 : vector<16x1xi1> to vector<16x128xi1>
    %35 = vector.broadcast %cst_14 : f32 to vector<16x128xf32>
    %36 = arith.select %34, %20, %35 : vector<16x128xi1>, vector<16x128xf32>
    %37 = arith.addf %6, %30 : vector<16x128xf32>
    %38 = vector.broadcast %3 : vector<1x128xf32> to vector<16x128xf32>
    %39 = arith.addf %37, %38 : vector<16x128xf32>
    %40 = arith.addf %7, %36 : vector<16x128xf32>
    %41 = vector.broadcast %3 : vector<1x128xf32> to vector<16x128xf32>
    %42 = arith.addf %40, %41 : vector<16x128xf32>
    %c0_15 = arith.constant 0 : index
    %c0_16 = arith.constant 0 : index
    %c0_17 = arith.constant 0 : index
    %43 = vector.load %arg7[%c0_15, %c0_16, %c0_17] : memref<1x16x256xf32, #tpu.memory_space<vmem>>, vector<1x16x128xf32>
    %44 = vector.shape_cast %43 : vector<1x16x128xf32> to vector<16x128xf32>
    %45 = vector.shape_cast %39 : vector<16x128xf32> to vector<1x16x128xf32>
    tpu.vector_store %arg7[%c0_15, %c0_16, %c0_17], %45 {strides = array<i32>} : memref<1x16x256xf32, #tpu.memory_space<vmem>>, vector<1x16x128xf32>,
    %c0_18 = arith.constant 0 : index
    %c0_19 = arith.constant 0 : index
    %c128 = arith.constant 128 : index
    %46 = vector.load %arg7[%c0_18, %c0_19, %c128] : memref<1x16x256xf32, #tpu.memory_space<vmem>>, vector<1x16x128xf32>
    %47 = vector.shape_cast %46 : vector<1x16x128xf32> to vector<16x128xf32>
    %48 = vector.shape_cast %42 : vector<16x128xf32> to vector<1x16x128xf32>
    tpu.vector_store %arg7[%c0_18, %c0_19, %c128], %48 {strides = array<i32>} : memref<1x16x256xf32, #tpu.memory_space<vmem>>, vector<1x16x128xf32>,
    return
  }
  func.func @transform_0(%arg0: i32, %arg1: i32) -> (i32, i32, i32) {
    %c0_i32 = arith.constant 0 : i32
    %c0_i32_0 = arith.constant 0 : i32
    return %arg0, %arg1, %c0_i32 : i32, i32, i32
  }
  func.func @transform_1(%arg0: i32, %arg1: i32) -> (i32, i32, i32) {
    %c2_i32 = arith.constant 2 : i32
    %0 = arith.muli %arg1, %c2_i32 : i32
    %c1_i32 = arith.constant 1 : i32
    %1 = arith.subi %0, %c1_i32 : i32
    %c0_i32 = arith.constant 0 : i32
    %2 = arith.maxsi %1, %c0_i32 : i32
    %c0_i32_0 = arith.constant 0 : i32
    %c0_i32_1 = arith.constant 0 : i32
    return %arg0, %2, %c0_i32_0 : i32, i32, i32
  }
  func.func @transform_2(%arg0: i32, %arg1: i32) -> (i32, i32, i32) {
    %c1_i32 = arith.constant 1 : i32
    %0 = arith.addi %arg1, %c1_i32 : i32
    %c2_i32 = arith.constant 2 : i32
    %1 = arith.muli %0, %c2_i32 : i32
    %c1_i32_0 = arith.constant 1 : i32
    %2 = arith.minsi %1, %c1_i32_0 : i32
    %c0_i32 = arith.constant 0 : i32
    %c0_i32_1 = arith.constant 0 : i32
    return %arg0, %2, %c0_i32 : i32, i32, i32
  }
  func.func @transform_3(%arg0: i32, %arg1: i32) -> (i32, i32) {
    %c0_i32 = arith.constant 0 : i32
    %c0_i32_0 = arith.constant 0 : i32
    %c0_i32_1 = arith.constant 0 : i32
    return %c0_i32, %c0_i32_0 : i32, i32
  }
  func.func @transform_4(%arg0: i32, %arg1: i32) -> (i32, i32) {
    %c0_i32 = arith.constant 0 : i32
    %c0_i32_0 = arith.constant 0 : i32
    %c0_i32_1 = arith.constant 0 : i32
    return %c0_i32, %c0_i32_0 : i32, i32
  }
  func.func @transform_5(%arg0: i32, %arg1: i32) -> (i32, i32, i32) {
    %c0_i32 = arith.constant 0 : i32
    %c0_i32_0 = arith.constant 0 : i32
    return %arg0, %arg1, %c0_i32 : i32, i32, i32
  }
}

</mosaic_0001>

<bundles_post_ra>
// kernel: tpu_custom_call.1
= control target key start
LH: loop header
LB: loop body
LE: loop exit
PB: predicated region body
PF: predicated region fallthrough
CT: control target
= control target key end

     0   :  { %s1943_s0 = inlined_call_operand.hbm [shape: f32[2,16,128], index: 0, kind: input, shape index: {}]   ;;  %s1944_s1 = inlined_call_operand.hbm [shape: f32[2,16,128], index: 1, kind: input, shape index: {}]   ;;  %s1945_s2 = inlined_call_operand.hbm [shape: f32[2,16,128], index: 2, kind: input, shape index: {}]   ;;  %s1946_s3 = inlined_call_operand.hbm [shape: f32[128,512], index: 3, kind: input, shape index: {}]   ;;  %s1947_s4 = inlined_call_operand.vmem [shape: f32[1,128], index: 4, kind: input, shape index: {}]   ;;  %s1948_s5 = inlined_call_operand.hbm [shape: f32[2,16,256], index: 5, kind: output, shape index: {}]  }
   0x1   :  { %1967 = sst [smem:[#allocation22_spill]] %s1944_s1 }
   0x2   :  { %1968 = sst [smem:[#allocation23_spill]] %s1948_s5 }
   0x3   :  { %10 = vsyncpa [#allocation3], 0 }
   0x4   :  { %12 = vsyncpa [#allocation3 + $0x1], 0 }
   0x5   :  { %13 = vsyncpa [#allocation6], 0 }
   0x6   :  { %15 = vsyncpa [#allocation6 + $0x1], 0 }
   0x7   :  { %16 = vsyncpa [#allocation9], 0 }
   0x8   :  { %17 = vsyncpa [#allocation4], 0 }
   0x9   :  { %19 = vsyncpa [#allocation4 + $0x1], 0  ;;  %s1569_s18 = smov 0   ;;  %s1571_s19 = smov 0  }
   0xa   :  { %s1573_s20 = smov 0   ;;  %s1575_s21 = smov 0  }
   0xb   :  { %s1577_s22 = smov 0   ;;  %s1579_s23 = smov 0  }
   0xc LB: > { %1969 = sst [smem:[#allocation15_spill]] %s1503_s18  ;;  %s37_s24 = sadd.s32 1, %s1519_s22  ;;  %s1523_s23 = sphi %s1579_s23, %s25_s23   ;;  %s1519_s22 = sphi %s1577_s22, %s2003_s22   ;;  %s1515_s21 = sphi %s1575_s21, %s2002_s21   ;;  %s1511_s20 = sphi %s1573_s20, %s2001_s20   ;;  %s1507_s19 = sphi %s1571_s19, %s2005_s19   ;;  %s1503_s18 = sphi %s1569_s18, %s2004_s18  }
   0xd   : > { %1970 = sst [smem:[#allocation16_spill]] %s1511_s20  ;;  %s46_s25 = sadd.s32 1, %s1511_s20 }
   0xe   : > { %1971 = sst [smem:[#allocation17_spill]] %s1519_s22  ;;  %p39_p0 = scmp.ge.s32.totalorder %s37_s24, 2 }
   0xf   : > { %1972 = sst [smem:[#allocation18_spill]] %s1523_s23  ;;  %p1949_p1 = scmp.ne.s32.totalorder %s1511_s20, %s1507_s19 }
  0x10   : > { %p54_p2 = scmp.eq.s32.totalorder %s1523_s23, 0  ;;  %s2007_s24 = smov (%p39_p0, %s37_s24), 0 }
  0x11   : > { %1973 = sst [smem:[#allocation19_spill]] %s2007_s24  ;;  %p1254_p5 = scmp.lt.s32.totalorder %s1523_s23, 2 }
  0x12   : > { %p55_p4 = por %p54_p2, %p1949_p1  ;;  %s41_s26 = ssub.s32 %s1519_s22, %s2007_s24 }
  0x13   : > { %s1614_s27 = sand.u32 1, %s1511_s20   ;;  %p44_p6 = scmp.eq.s32.totalorder %s41_s26, 0 }
  0x14   : > { %s1617_s28 = sshll.u32 %s1519_s22, 8  ;;  %p1625_p7 = pnand %p1254_p5, %p55_p4 }
  0x15   : > { %s1623_s6 = scalar_lea.hbm %s1943_s0, %s1617_s28  ;;  %s264_s9 = sand.u32 1, %s1523_s23  }
  0x16   : > { %s1974_s7 = scalar_select %p1625_p7, 1, 0 }
  0x17   : > { %s1630_s8 = scalar_select %p44_p6, %s1511_s20, %s46_s25  }
  0x18   : > { %s1950_s10 = sshll.u32 %s1614_s27, 3  ;;  %s1976_s1 = sld [smem:[#allocation22_spill]] }
  0x19   : > { %1975 = sst [smem:[#allocation20_spill]] %s1630_s8  ;;  %s268_s14 = scalar_lea.vmem [#allocation5], %s1950_s10 }
  0x1a   : > { %s281_s15 = sshll.u32 %s268_s14, 4  ;;  %s1644_s16 = scalar_lea.sflag [#allocation6], %s264_s9  ;;  %s1642_s15 = int_to_ptr.vmem [resolvable:$true] %s281_s15 }
  0x1b   : > { %p1650_p9 = pneg %p1625_p7 }
  0x1d   : > { %s1977_s25 = scalar_select %p1650_p9, 1, 0 }
  0x1e   : > { %s1638_s13 = scalar_lea.hbm %s1976_s1, %s1617_s28  ;;  %s1320_s30 = scalar_lea.hbm %s1976_s1, 512 }
  0x1f   : > { %s1315_s17 = scalar_lea.hbm %s1638_s13, 128  ;;  %p1321_p12 = scmp.lt.u32.totalorder %s1638_s13, %s1976_s1 }
  0x20   : > { %p1316_p8 = scmp.ne.s32.totalorder %s1638_s13, %s1315_s17  ;;  %p1322_p13 = scmp.lt.u32.totalorder %s1320_s30, %s1315_s17 }
  0x21   : > { %p1324_p2 = scmp.lt.u32.totalorder %s1315_s17, %s1638_s13 }
  0x22   : > { %p1318_p10 = pnand %p1650_p9, %p1316_p8  ;;  %p1323_p0 = por %p1322_p13, %p1321_p12 }
  0x24   : > { %p1319_p11 = pneg %p1318_p10  ;;  %p1325_p4 = por %p1324_p2, %p1323_p0 }
  0x26   : > { %p1326_p5 = pnand %p1325_p4, %p1319_p11 }
  0x28   : > { %1329 = shalt.err (!%p1326_p5)
}
  0x29   : > { %s1330_s9 = scalar_lea.vmem %s1642_s15, 128  ;;  %s1525_s14 = smov [#allocation5]  }
  0x2a   : > { %p1331_p6 = scmp.ne.s32.totalorder %s1642_s15, %s1330_s9  ;;  %s1335_s26 = sshll.u32 %s1525_s14, 4  ;;  %s1336_s26 = int_to_ptr.vmem [resolvable:$false] %s1335_s26 }
  0x2b   : > { %s1337_s29 = scalar_lea.vmem %s1336_s26, 256  ;;  %p1338_p3 = scmp.lt.s32.totalorder %s1642_s15, %s1336_s26 }
  0x2c   : > { %p1333_p8 = pnand %p1331_p6, %p1650_p9  ;;  %p1339_p1 = scmp.lt.s32.totalorder %s1337_s29, %s1330_s9 }
  0x2e   : > { %p1334_p10 = pneg %p1333_p8  ;;  %p1340_p12 = por %p1339_p1, %p1338_p3 }
  0x30   : > { %p1341_p13 = pnand %p1340_p12, %p1334_p10 }
  0x32   : > { %1344 = shalt.err (!%p1341_p13)
}
  0x33   : > { %1245 = dma.hbm_to_vmem [thread:$0]  (!%p1625_p7), %s1638_s13, 128, %s1642_s15, %s1644_s16  }
  0x34   : > { %s1675_s17 = sadd.s32 4294967295, %s1523_s23   ;;  %s976_s30 = sadd.s32 4294967294, %s1523_s23  }
  0x35   : > { %p59_p1 = scmp.ne.s32.totalorder %s1507_s19, %s1503_s18  ;;  %p1956_p3 = scmp.eq.s32.totalorder %s1675_s17, 0 }
  0x36   : > { %p199_p11 = scmp.eq.s32.totalorder %s1675_s17, 1  ;;  %p205_p0 = scmp.eq.s32.totalorder %s976_s30, 1 }
  0x37   : > { %p977_p2 = scmp.ge.s32.totalorder %s1523_s23, 1  ;;  %p1685_p4 = por %p1956_p3, %p59_p1 }
  0x38   : > { %p1979_p5 = scmp.ne.s32.totalorder %s1511_s20, %s1507_s19  ;;  %p1696_p8 = por %p205_p0, %p59_p1 }
  0x39   : > { %s1978_s11 = scalar_select %p1685_p4, 1, 0 }
  0x3a   : > { %p1692_p6 = por %p199_p11, %p1979_p5  ;;  %p212_p10 = scmp.lt.s32.totalorder %s1523_s23, 3 }
  0x3b   : > { %s1981_s15 = scalar_select %p1696_p8, 1, 0 }
  0x3c   : > { %s1980_s13 = scalar_select %p1692_p6, 1, 0 }
  0x3d   : > { %1982 = sst [smem:[#allocation21_spill]] %s1981_s15  ;;  %p1701_p12 = pnand %p977_p2, %p212_p10 }
  0x3e   : > { %s1526_s9 = smov [#allocation8]   ;;  %s980_s26 = sshll.u32 %s1614_s27, 4 }
  0x3f   : > { %s1983_s12 = scalar_select %p1701_p12, 1, 0 }
  0x40   : > { %s224_s14 = sshll.u32 %s1526_s9, 4  ;;  %p1235_p13 = pneg %p1701_p12  ;;  %s1705_s14 = int_to_ptr.vmem [resolvable:$true] %s224_s14 }
  0x41   : > { %s245_s30 = scalar_lea.vmem [#allocation2], %s980_s26  ;;  %s1345_s22 = scalar_lea.hbm %s1946_s3, 8192 }
  0x42   : > { %p1712_p11 = pnand %p1235_p13, %p1956_p3  ;;  %s254_s10 = sshll.u32 %s245_s30, 4  ;;  %s1716_s10 = int_to_ptr.vmem [resolvable:$true] %s254_s10 }
  0x43   : > { %p1346_p1 = scmp.ne.s32.totalorder %s1946_s3, %s1345_s22  ;;  %p1352_p10 = scmp.lt.u32.totalorder %s1345_s22, %s1946_s3 }
  0x44   : > { %p1347_p0 = pneg %p1712_p11 }
  0x46   : > { %p1348_p2 = pnand %p1347_p0, %p1346_p1 }
  0x48   : > { %p1349_p5 = pneg %p1348_p2 }
  0x4a   : > { %p1354_p13 = pnand %p1352_p10, %p1349_p5 }
  0x4c   : > { %1357 = shalt.err (!%p1354_p13)
}
  0x4d   : > { %s1358_s26 = scalar_lea.vmem %s1705_s14, 8192  ;;  %p1366_p4 = scmp.lt.s32.totalorder %s1705_s14, %s1705_s14 }
  0x4e   : > { %p1359_p3 = scmp.ne.s32.totalorder %s1705_s14, %s1358_s26  ;;  %p1367_p12 = scmp.lt.s32.totalorder %s1358_s26, %s1358_s26 }
  0x50   : > { %p1361_p8 = pnand %p1359_p3, %p1347_p0  ;;  %p1368_p7 = por %p1367_p12, %p1366_p4 }
  0x52   : > { %p1362_p6 = pneg %p1361_p8 }
  0x54   : > { %p1369_p9 = pnand %p1368_p7, %p1362_p6 }
  0x56   : > { %1372 = shalt.err (!%p1369_p9)
}
  0x57   : > { %s1527_s1 = smov 512   ;;  %s1528_s20 = smov 32  }
  0x58   : > { %1238 = dma.hbm_to_vmem [thread:$0]  (!%p1712_p11), %s1946_s3, 8192, %s1705_s14, [#allocation9], %s1527_s1, %s1527_s1, %s1528_s20  }
  0x59   : > { %s1004_s24 = sadd.s32 128, %s1617_s28  ;;  %s242_s8 = scalar_lea.sflag [#allocation3], %s1614_s27 }
  0x5a   : > { %s1373_s30 = scalar_lea.hbm %s1623_s6, 256  ;;  %p1985_p9 = scmp.ne.s32.totalorder %s1977_s25, 0 }
  0x5b   : > { %p1374_p7 = scmp.ne.s32.totalorder %s1623_s6, %s1373_s30  ;;  %s1378_s15 = scalar_lea.hbm %s1943_s0, 512 }
  0x5c   : > { %p1379_p6 = scmp.lt.u32.totalorder %s1623_s6, %s1943_s0  ;;  %p1380_p8 = scmp.lt.u32.totalorder %s1378_s15, %s1373_s30 }
  0x5d   : > { %p1376_p3 = pnand %p1374_p7, %p1985_p9  ;;  %p1382_p1 = scmp.lt.u32.totalorder %s1373_s30, %s1623_s6 }
  0x5e   : > { %p1381_p12 = por %p1380_p8, %p1379_p6 }
  0x5f   : > { %p1377_p4 = pneg %p1376_p3 }
  0x60   : > { %p1383_p0 = por %p1382_p1, %p1381_p12 }
  0x62   : > { %p1384_p11 = pnand %p1383_p0, %p1377_p4 }
  0x64   : > { %1387 = shalt.err (!%p1384_p11)
}
  0x65   : > { %s1388_s14 = scalar_lea.vmem %s1716_s10, 256  ;;  %s1529_s29 = smov [#allocation2]  }
  0x66   : > { %p1389_p2 = scmp.ne.s32.totalorder %s1716_s10, %s1388_s14  ;;  %s1393_s1 = sshll.u32 %s1529_s29, 4  ;;  %s1394_s1 = int_to_ptr.vmem [resolvable:$false] %s1393_s1 }
  0x67   : > { %s1395_s5 = scalar_lea.vmem %s1394_s1, 512  ;;  %p1396_p13 = scmp.lt.s32.totalorder %s1716_s10, %s1394_s1 }
  0x68   : > { %p1391_p5 = pnand %p1389_p2, %p1985_p9  ;;  %p1397_p7 = scmp.lt.s32.totalorder %s1395_s5, %s1388_s14 }
  0x6a   : > { %p1392_p10 = pneg %p1391_p5  ;;  %p1398_p3 = por %p1397_p7, %p1396_p13 }
  0x6c   : > { %p1399_p6 = pnand %p1398_p3, %p1392_p10 }
  0x6e   : > { %1402 = shalt.err (!%p1399_p6)
}
  0x6f   : > { %s1530_s18 = smov 128   ;;  %s1531_s15 = smov 8  }
  0x70   : > { %p1986_p4 = scmp.ne.s32.totalorder %s1974_s7, 0  ;;  %s1769_s23 = scalar_lea.hbm %s1945_s2, %s1004_s24 }
  0x71   : > { %s1987_s30 = sshll.u32 %s1614_s27, 3  ;;  %s1403_s14 = scalar_lea.hbm %s1769_s23, 128 }
  0x72   : > { %1242 = dma.hbm_to_vmem [thread:$0]  (!%p1986_p4), %s1623_s6, 256, %s1716_s10, %s242_s8, %s1530_s18, %s1530_s18, %s1531_s15  }
  0x73   : > { %s292_s9 = scalar_lea.vmem [#allocation7], %s1987_s30  ;;  %p1404_p8 = scmp.ne.s32.totalorder %s1769_s23, %s1403_s14 }
  0x74   : > { %s305_s26 = sshll.u32 %s292_s9, 4  ;;  %s1408_s10 = scalar_lea.hbm %s1945_s2, 512  ;;  %s306_s26 = int_to_ptr.vmem [resolvable:$true] %s305_s26 }
  0x75   : > { %p1406_p12 = pnand %p1404_p8, %p1985_p9  ;;  %p1409_p0 = scmp.lt.u32.totalorder %s1769_s23, %s1945_s2 }
  0x76   : > { %p1410_p11 = scmp.lt.u32.totalorder %s1408_s10, %s1403_s14  ;;  %p1412_p5 = scmp.lt.u32.totalorder %s1403_s14, %s1769_s23 }
  0x77   : > { %p1407_p1 = pneg %p1406_p12 }
  0x78   : > { %p1411_p2 = por %p1410_p11, %p1409_p0 }
  0x7a   : > { %p1413_p10 = por %p1412_p5, %p1411_p2 }
  0x7c   : > { %p1414_p13 = pnand %p1413_p10, %p1407_p1 }
  0x7e   : > { %1417 = shalt.err (!%p1414_p13)
}
  0x7f   : > { %s1418_s27 = scalar_lea.vmem %s306_s26, 128  ;;  %s1532_s29 = smov [#allocation7]  }
  0x80   : > { %p1419_p7 = scmp.ne.s32.totalorder %s306_s26, %s1418_s27  ;;  %s1423_s1 = sshll.u32 %s1532_s29, 4  ;;  %s1424_s1 = int_to_ptr.vmem [resolvable:$false] %s1423_s1 }
  0x81   : > { %s1425_s5 = scalar_lea.vmem %s1424_s1, 256  ;;  %p1426_p8 = scmp.lt.s32.totalorder %s306_s26, %s1424_s1 }
  0x82   : > { %p1421_p3 = pnand %p1419_p7, %p1985_p9  ;;  %p1427_p12 = scmp.lt.s32.totalorder %s1425_s5, %s1418_s27 }
  0x84   : > { %p1422_p6 = pneg %p1421_p3  ;;  %p1428_p4 = por %p1427_p12, %p1426_p8 }
  0x86   : > { %p1429_p0 = pnand %p1428_p4, %p1422_p6 }
  0x88   : > { %1432 = shalt.err (!%p1429_p0)
}
  0x89   : > { %p1988_p11 = scmp.ne.s32.totalorder %s1974_s7, 0  ;;  %p1989_p1 = scmp.ne.s32.totalorder %s1983_s12, 0 }
  0x8a   : > { %s1794_s25 = sand.u32 (!%p1989_p1), 1, %s1507_s19   ;;  %p1990_p9 = scmp.ne.s32.totalorder (!%p1989_p1), %s1978_s11, 0 }
  0x8b   : > { %1248 = dma.hbm_to_vmem [thread:$0]  (!%p1988_p11), %s1769_s23, 128, %s306_s26, %s1644_s16  }
  0x8c   : > { %314 = sbr.rel (%p1989_p1) target bundleno = 458 (0x1ca), region = 40  ;;  %s990_s18 = sshll.u32 (!%p1989_p1), %s1794_s25, 4 }
  0x8d   : > { %s317_s15 = scalar_lea.sflag (!%p1989_p1), [#allocation3], %s1794_s25  ;;  %s1798_s20 = scalar_lea.vmem (!%p1989_p1), [#allocation2], %s990_s18 }
  0x93   : > { %1486 = dma.done.wait (%p1990_p9), %s317_s15, 256  }
  0x94   : > { %1488 = vsyncadd (%p1990_p9), %s317_s15, 4294967040  ;;  %s325_s7 = sand.u32 1, %s1675_s17   ;;  %s991_s16 = sshll.u32 %s1794_s25, 3 }
  0x95   : > { %s326_s12 = scalar_lea.sflag [#allocation6], %s325_s7  ;;  %s1806_s22 = scalar_lea.vmem [#allocation5], %s991_s16 }
  0x96   : > { %1490 = dma.done.wait (%p1990_p9), %s326_s12, 256  }
  0x97   : > { %1492 = vsyncadd (%p1990_p9), %s326_s12, 4294967040  ;;  %s1812_s23 = scalar_lea.vmem [#allocation7], %s991_s16  ;;  %p1991_p4 = scmp.eq.s32.totalorder %s1675_s17, 0 }
  0x99   : > { %1494 = dma.done.wait (%p1991_p4), [#allocation9], 8192   ;;  %p1992_p2 = pmov %p1991_p4 }
  0x9a   : > { %v1533_v0 = vmov 0.0   ;;  %v392_v1 = vld [vmem:[#allocation8 + $0x8] sm:$0xff]  ;;  %v394_v3 = vld [vmem:[#allocation8 + $0x18] sm:$0xff]  ;;  %v391_v6 = vld [vmem:[#allocation8] sm:$0xff]  ;;  %vm1535_vm0 = vmmov 0   ;;  %vm763_vm1 = vcmask 1046528  }
  0x9b   : > { %1496 = vsyncadd (%p1992_p2), [#allocation9], 4294959104  ;;  %520 = vmatprep.mubr.f32.mxu0 %v1533_v0  ;;  %597 = vmatprep.mubr.f32.mxu1 %v1533_v0  ;;  %v396_v2 = vld [vmem:[#allocation8 + $0x28] sm:$0xff]  ;;  %v398_v5 = vld [vmem:[#allocation8 + $0x38] sm:$0xff]  ;;  %s994_s17 = sshll.u32 %s1794_s25, 5  ;;  %vm754_vm2 = vcmask 1040384  }
  0x9c   : > { %v1111_v4 = vpack.c.bf16 %v396_v2, %v392_v1  ;;  %v395_v7 = vld [vmem:[#allocation8 + $0x20] sm:$0xff]  ;;  %v1820_v8 = vpack.c.bf16 %v398_v5, %v394_v3  ;;  %v393_v10 = vld [vmem:[#allocation8 + $0x10] sm:$0xff]  ;;  %v400_v12 = vld [vmem:[#allocation8 + $0x48] sm:$0xff]  ;;  %s378_s9 = scalar_lea.vmem [#allocation10], %s994_s17  ;;  %s1005_s14 = sshll.u32 %s1515_s21, 9 }
  0x9d   : > { %v1822_v9 = vpack.c.bf16 %v395_v7, %v391_v6  ;;  %v397_v11 = vld [vmem:[#allocation8 + $0x30] sm:$0xff]  ;;  %v404_v14 = vld [vmem:[#allocation8 + $0x68] sm:$0xff]  ;;  %v402_v15 = vld [vmem:[#allocation8 + $0x58] sm:$0xff]  ;;  %s831_s26 = sshll.u32 %s378_s9, 4  ;;  %s1993_s10 = sld [smem:[#allocation23_spill]]  ;;  %s1889_s26 = int_to_ptr.vmem [resolvable:$true] %s831_s26 }
  0x9e   : > { %1112 = vmatprep.subr.bf16.mxu0 %v1111_v4  ;;  %v1145_v13 = vpack.c.bf16 %v397_v11, %v393_v10  ;;  %v406_v16 = vld [vmem:[#allocation8 + $0x78] sm:$0xff]  ;;  %1144 = vmatprep.subr.bf16.mxu1 %v1820_v8  ;;  %v1115_v17 = vpack.c.bf16 %v404_v14, %v400_v12  ;;  %v399_v19 = vld [vmem:[#allocation8 + $0x40] sm:$0xff]  ;;  %v401_v21 = vld [vmem:[#allocation8 + $0x50] sm:$0xff]  ;;  %s815_s24 = scalar_lea.sflag [#allocation4], %s1794_s25  ;;  %s1433_s27 = scalar_lea.vmem %s1889_s26, 512 }
  0x9f   : > { %1114 = vmatpush1.bf16.msra.mxu0 %v1822_v9  ;;  %v1826_v18 = vpack.c.bf16 %v406_v16, %v402_v15  ;;  %v403_v20 = vld [vmem:[#allocation8 + $0x60] sm:$0xff]  ;;  %v405_v23 = vld [vmem:[#allocation8 + $0x70] sm:$0xff]  ;;  %v408_v24 = vld [vmem:[#allocation8 + $0x88] sm:$0xff]  ;;  %p1434_p5 = scmp.ne.s32.totalorder %s1889_s26, %s1433_s27  ;;  %p1994_p10 = scmp.ne.s32.totalorder %s1980_s13, 0 }
  0xa0   : > { %1146 = vmatpush1.bf16.msra.mxu1 %v1145_v13  ;;  %v1828_v22 = vpack.c.bf16 %v403_v20, %v399_v19  ;;  %v412_v25 = vld [vmem:[#allocation8 + $0xa8] sm:$0xff]  ;;  %1116 = vmatprep.subr.bf16.mxu0 %v1115_v17  ;;  %v1149_v26 = vpack.c.bf16 %v405_v23, %v401_v21  ;;  %v410_v28 = vld [vmem:[#allocation8 + $0x98] sm:$0xff]  ;;  %v407_v30 = vld [vmem:[#allocation8 + $0x80] sm:$0xff]  ;;  %s1536_s21 = smov [#allocation10]  }
  0xa1   : > { %1148 = vmatprep.subr.bf16.mxu1 %v1826_v18  ;;  %v1119_v27 = vpack.c.bf16 %v412_v25, %v408_v24  ;;  %v414_v29 = vld [vmem:[#allocation8 + $0xb8] sm:$0xff]  ;;  %v411_v32 = vld [vmem:[#allocation8 + $0xa0] sm:$0xff]  ;;  %v409_v33 = vld [vmem:[#allocation8 + $0x90] sm:$0xff]  ;;  %p1435_p13 = pnand %p1434_p5, %p1994_p10  ;;  %s1437_s29 = sshll.u32 %s1536_s21, 4  ;;  %s1438_s29 = int_to_ptr.vmem [resolvable:$false] %s1437_s29 }
  0xa2   : > { %v1831_v31 = vpack.c.bf16 %v414_v29, %v410_v28  ;;  %v413_v34 = vld [vmem:[#allocation8 + $0xb0] sm:$0xff]  ;;  %v1834_v35 = vpack.c.bf16 %v411_v32, %v407_v30  ;;  %v416_v36 = vld [vmem:[#allocation8 + $0xc8] sm:$0xff]  ;;  %v418_v38 = vld [vmem:[#allocation8 + $0xd8] sm:$0xff]  ;;  %s1439_s1 = scalar_lea.vmem %s1438_s29, 1024  ;;  %p1440_p3 = scmp.lt.s32.totalorder %s1889_s26, %s1438_s29 }
  0xa3   : > { %1118 = vmatpush1.bf16.msra.mxu0 %v1828_v22  ;;  %v420_v37 = vld [vmem:[#allocation8 + $0xe8] sm:$0xff]  ;;  %v1153_v39 = vpack.c.bf16 %v413_v34, %v409_v33  ;;  %v422_v41 = vld [vmem:[#allocation8 + $0xf8] sm:$0xff]  ;;  %v415_v42 = vld [vmem:[#allocation8 + $0xc0] sm:$0xff]  ;;  %s1894_s8 = scalar_lea.hbm %s1993_s10, %s1005_s14  ;;  %p1436_p7 = pneg %p1435_p13 }
  0xa4   : > { %1150 = vmatpush1.bf16.msra.mxu1 %v1149_v26  ;;  %1120 = vmatprep.subr.bf16.mxu0 %v1119_v27  ;;  %v1123_v40 = vpack.c.bf16 %v420_v37, %v416_v36  ;;  %v419_v43 = vld [vmem:[#allocation8 + $0xe0] sm:$0xff]  ;;  %v1837_v44 = vpack.c.bf16 %v422_v41, %v418_v38  ;;  %v417_v45 = vld [vmem:[#allocation8 + $0xd0] sm:$0xff]  ;;  %v424_v47 = vld [vmem:[#allocation8 + $0x108] sm:$0xff]  ;;  %v1534_v41 = vmov 0.0|0.0   ;;  %p1441_p6 = scmp.lt.s32.totalorder %s1439_s1, %s1433_s27 }
  0xa5   : > { %1152 = vmatprep.subr.bf16.mxu1 %v1831_v31  ;;  %v421_v46 = vld [vmem:[#allocation8 + $0xf0] sm:$0xff]  ;;  %v428_v48 = vld [vmem:[#allocation8 + $0x128] sm:$0xff]  ;;  %v426_v49 = vld [vmem:[#allocation8 + $0x118] sm:$0xff]  ;;  %v1840_v51 = vpack.c.bf16 %v419_v43, %v415_v42 }
  0xa6   : > { %v430_v50 = vld [vmem:[#allocation8 + $0x138] sm:$0xff]  ;;  %v1157_v52 = vpack.c.bf16 %v421_v46, %v417_v45  ;;  %v1127_v53 = vpack.c.bf16 %v428_v48, %v424_v47  ;;  %v423_v54 = vld [vmem:[#allocation8 + $0x100] sm:$0xff]  ;;  %v425_v56 = vld [vmem:[#allocation8 + $0x110] sm:$0xff]  ;;  %p1442_p8 = por %p1441_p6, %p1440_p3 }
  0xa7   : > { %1122 = vmatpush1.bf16.msra.mxu0 %v1834_v35  ;;  %v427_v55 = vld [vmem:[#allocation8 + $0x120] sm:$0xff]  ;;  %v1843_v57 = vpack.c.bf16 %v430_v50, %v426_v49  ;;  %v429_v58 = vld [vmem:[#allocation8 + $0x130] sm:$0xff]  ;;  %v432_v59 = vld [vmem:[#allocation8 + $0x148] sm:$0xff] }
  0xa8   : > { %1154 = vmatpush1.bf16.msra.mxu1 %v1153_v39  ;;  %1124 = vmatprep.subr.bf16.mxu0 %v1123_v40  ;;  %v436_v60 = vld [vmem:[#allocation8 + $0x168] sm:$0xff]  ;;  %v434_v61 = vld [vmem:[#allocation8 + $0x158] sm:$0xff]  ;;  %v1846_v63 = vpack.c.bf16 %v427_v55, %v423_v54  ;;  %v1161_v1 = vpack.c.bf16 %v429_v58, %v425_v56  ;;  %v431_v3 = vld [vmem:[#allocation8 + $0x140] sm:$0xff]  ;;  %p1443_p12 = pnand %p1442_p8, %p1436_p7 }
  0xa9   : > { %1156 = vmatprep.subr.bf16.mxu1 %v1837_v44  ;;  %v438_v62 = vld [vmem:[#allocation8 + $0x178] sm:$0xff]  ;;  %v1131_v2 = vpack.c.bf16 %v436_v60, %v432_v59  ;;  %v435_v4 = vld [vmem:[#allocation8 + $0x160] sm:$0xff]  ;;  %v433_v5 = vld [vmem:[#allocation8 + $0x150] sm:$0xff] }
  0xaa   : > { %v1849_v6 = vpack.c.bf16 %v438_v62, %v434_v61  ;;  %v437_v7 = vld [vmem:[#allocation8 + $0x170] sm:$0xff]  ;;  %v440_v10 = vld [vmem:[#allocation8 + $0x188] sm:$0xff]  ;;  %v442_v12 = vld [vmem:[#allocation8 + $0x198] sm:$0xff]  ;;  %v1852_v14 = vpack.c.bf16 %v435_v4, %v431_v3 }
  0xab   : > { %1126 = vmatpush1.bf16.msra.mxu0 %v1840_v51  ;;  %v444_v11 = vld [vmem:[#allocation8 + $0x1a8] sm:$0xff]  ;;  %v446_v13 = vld [vmem:[#allocation8 + $0x1b8] sm:$0xff]  ;;  %v1165_v15 = vpack.c.bf16 %v437_v7, %v433_v5  ;;  %v439_v17 = vld [vmem:[#allocation8 + $0x180] sm:$0xff] }
  0xac   : > { %1158 = vmatpush1.bf16.msra.mxu1 %v1157_v52  ;;  %1128 = vmatprep.subr.bf16.mxu0 %v1127_v53  ;;  %v1135_v16 = vpack.c.bf16 %v444_v11, %v440_v10  ;;  %v443_v19 = vld [vmem:[#allocation8 + $0x1a0] sm:$0xff]  ;;  %v441_v20 = vld [vmem:[#allocation8 + $0x190] sm:$0xff]  ;;  %v1855_v21 = vpack.c.bf16 %v446_v13, %v442_v12  ;;  %v448_v24 = vld [vmem:[#allocation8 + $0x1c8] sm:$0xff] }
  0xad   : > { %1160 = vmatprep.subr.bf16.mxu1 %v1843_v57  ;;  %v445_v23 = vld [vmem:[#allocation8 + $0x1b0] sm:$0xff]  ;;  %v452_v25 = vld [vmem:[#allocation8 + $0x1e8] sm:$0xff]  ;;  %v450_v26 = vld [vmem:[#allocation8 + $0x1d8] sm:$0xff]  ;;  %v1137_v28 = vpack.c.bf16 %v443_v19, %v439_v17 }
  0xae   : > { %v454_v27 = vld [vmem:[#allocation8 + $0x1f8] sm:$0xff]  ;;  %v1169_v29 = vpack.c.bf16 %v445_v23, %v441_v20  ;;  %v1139_v30 = vpack.c.bf16 %v452_v25, %v448_v24  ;;  %v447_v32 = vld [vmem:[#allocation8 + $0x1c0] sm:$0xff]  ;;  %v449_v36 = vld [vmem:[#allocation8 + $0x1d0] sm:$0xff] }
  0xaf   : > { %1130 = vmatpush1.bf16.msra.mxu0 %v1846_v63  ;;  %v451_v33 = vld [vmem:[#allocation8 + $0x1e0] sm:$0xff]  ;;  %v1171_v34 = vpack.c.bf16 %v454_v27, %v450_v26  ;;  %v453_v37 = vld [vmem:[#allocation8 + $0x1f0] sm:$0xff]  ;;  %v390_v42 = vld [vmem:[%s1798_s20 + $0x8] sm:$0xff] }
  0xb0   : > { %1162 = vmatpush1.bf16.msra.mxu1 %v1161_v1  ;;  %1132 = vmatprep.subr.bf16.mxu0 %v1131_v2  ;;  %v1141_v38 = vpack.c.bf16 %v451_v33, %v447_v32  ;;  %v1173_v39 = vpack.c.bf16 %v453_v37, %v449_v36  ;;  %v389_v40 = vld [vmem:[%s1798_s20] sm:$0xff] }
  0xb1   : > { %1164 = vmatprep.subr.bf16.mxu1 %v1849_v6 }
  0xb3   : > { %1134 = vmatpush1.bf16.msra.mxu0 %v1852_v14 }
  0xb4   : > { %1166 = vmatpush1.bf16.msra.mxu1 %v1165_v15  ;;  %1136 = vmatprep.subr.bf16.mxu0 %v1135_v16 }
  0xb5   : > { %1168 = vmatprep.subr.bf16.mxu1 %v1855_v21 }
  0xb7   : > { %1138 = vmatpush1.bf16.msra.mxu0 %v1137_v28 }
  0xb8   : > { %1170 = vmatpush1.bf16.msra.mxu1 %v1169_v29  ;;  %1140 = vmatprep.subr.bf16.mxu0 %v1139_v30 }
  0xb9   : > { %1172 = vmatprep.subr.bf16.mxu1 %v1171_v34 }
  0xbb   : > { %1142 = vmatpush1.bf16.msra.mxu0 %v1141_v38 }
  0xbc   : > { %1174 = vmatpush1.bf16.msra.mxu1 %v1173_v39  ;;  %1175 = vmatprep.subr.bf16.mxu0 %v1534_v41 }
  0xbd   : > { %1199 = vmatprep.subr.bf16.mxu1 %v1534_v41 }
  0xbe   : > { %521 = vmatmul.mubr.f32.vlgmr.msra.gmra.mrb[0].mxu0 %v389_v40 }
  0xbf   : > { %598 = vmatmul.mubr.f32.vlgmr.msra.gmra.mrb[0].mxu1 %v389_v40  ;;  %1177 = vmatpush3.bf16.msra.mxu0 %v1820_v8  ;;  %v681_v8 = vld [vmem:[%s1812_s23] sm:$0x1] }
  0xc0   : > { %1201 = vmatpush3.bf16.msra.mxu1 %v1822_v9  ;;  %526 = vmatprep.mubr.f32.mxu0 %v1533_v0 }
  0xc1   : > { %603 = vmatprep.mubr.f32.mxu1 %v1533_v0  ;;  %1178 = vmatprep.subr.bf16.mxu0 %v1534_v41 }
  0xc2   : > { %527 = vmatmul.mubr.f32.gmra.mrb[2].mxu0 %v390_v42  ;;  %1202 = vmatprep.subr.bf16.mxu1 %v1534_v41 }
  0xc3   : > { %604 = vmatmul.mubr.f32.gmra.mrb[2].mxu1 %v390_v42  ;;  %1180 = vmatpush3.bf16.msra.mxu0 %v1826_v18 }
  0xc4   : > { %1204 = vmatpush3.bf16.msra.mxu1 %v1828_v22  ;;  %1181 = vmatprep.subr.bf16.mxu0 %v1534_v41 }
  0xc5   : > { %1205 = vmatprep.subr.bf16.mxu1 %v1534_v41  ;;  %1073 = vmatprep.mubr.msk.f32.mxu0 %vm1535_vm0, %v1533_v0 }
  0xc6   : > { %1108 = vmatprep.mubr.msk.f32.mxu1 %vm1535_vm0, %v1533_v0  ;;  %v610_v0 = vld [vmem:[%s1806_s22 + $0x7] sm:$0x1] }
  0xc7   : > { %1183 = vmatpush3.bf16.msra.mxu0 %v1831_v31 }
  0xc8   : > { %1207 = vmatpush3.bf16.msra.mxu1 %v1834_v35  ;;  %1184 = vmatprep.subr.bf16.mxu0 %v1534_v41 }
  0xc9   : > { %1208 = vmatprep.subr.bf16.mxu1 %v1534_v41 }
  0xcb   : > { %1186 = vmatpush3.bf16.msra.mxu0 %v1837_v44 }
  0xcc   : > { %1210 = vmatpush3.bf16.msra.mxu1 %v1840_v51  ;;  %1187 = vmatprep.subr.bf16.mxu0 %v1534_v41  ;;  %v995_v51 = vld [vmem:[%s1947_s4] ss:$0 sm:$0xff] }
  0xcd   : > { %1211 = vmatprep.subr.bf16.mxu1 %v1534_v41 }
  0xcf   : > { %1189 = vmatpush3.bf16.msra.mxu0 %v1843_v57  ;;  %v774_v57 = vlaneseq }
  0xd0   : > { %1213 = vmatpush3.bf16.msra.mxu1 %v1846_v63  ;;  %1190 = vmatprep.subr.bf16.mxu0 %v1534_v41 }
  0xd1   : > { %1214 = vmatprep.subr.bf16.mxu1 %v1534_v41  ;;  %v775_v58 = vshrl.u32 %v774_v57, 7 }
  0xd3   : > { %1192 = vmatpush3.bf16.msra.mxu0 %v1849_v6  ;;  %v776_v59 = vadd.s32 8, %v775_v58  ;;  %vm780_vm3 = vcmp.ge.s32.totalorder %v775_v58, 1 }
  0xd4   : > { %1216 = vmatpush3.bf16.msra.mxu1 %v1852_v14  ;;  %1193 = vmatprep.subr.bf16.mxu0 %v1534_v41 }
  0xd5   : > { %1217 = vmatprep.subr.bf16.mxu1 %v1534_v41  ;;  %vm789_vm4 = vcmp.le.s32.totalorder %v776_v59, 14 }
  0xd7   : > { %1195 = vmatpush3.bf16.msra.mxu0 %v1855_v21 }
  0xd8   : > { %1219 = vmatpush3.bf16.msra.mxu1 %v1137_v28  ;;  %1196 = vmatprep.subr.bf16.mxu0 %v1534_v41 }
  0xd9   : > { %1220 = vmatprep.subr.bf16.mxu1 %v1534_v41 }
  0xdb   : > { %1198 = vmatpush3.bf16.msra.mxu0 %v1171_v34 }
  0xdc   : > { %1222 = vmatpush3.bf16.msra.mxu1 %v1141_v38 }
  0xde   : > { %1074 = vmatmul.mubr.f32.vlgmr.msra.gmra.mrb[4].mxu0 %v610_v0 }
  0xdf   : > { %1109 = vmatmul.mubr.f32.vlgmr.msra.gmra.mrb[4].mxu1 %v681_v8 }
 0x191   : > { %v522_v9 = vpop.f32.mrb[0].mxu0 }
 0x192   : > { %v599_v18 = vpop.f32.mrb[0].mxu1  ;;  %v524_v22 = vpop.f32.mrb[1].mxu0  ;;  %v764_v35 = vrot.slane %v522_v9, 1 }
 0x193   : > { %v601_v31 = vpop.f32.mrb[1].mxu1 }
 0x194   : > { %v755_v48 = vrot.slane %v601_v31, 7 }
 0x195   : > { %v528_v43 = vpop.f32.mrb[2].mxu0 }
 0x196   : > { %v765_v44 = vrot.slane %v528_v43, 1  ;;  %v605_v45 = vpop.f32.mrb[2].mxu1  ;;  %v530_v46 = vpop.f32.mrb[3].mxu0 }
 0x197   : > { %v607_v47 = vpop.f32.mrb[3].mxu1 }
 0x198   : > { %v766_v49 = vsel %vm763_vm1, %v764_v35, %v765_v44  ;;  %v756_v50 = vrot.slane %v607_v47, 7 }
 0x199   : > { %v806_v52 = vadd.f32 %v766_v49, %v599_v18 }
 0x19a   : > { %v757_v53 = vsel %vm754_vm2, %v755_v48, %v756_v50 }
 0x19b   : > { %v797_v54 = vadd.f32 %v757_v53, %v530_v46  ;;  %v808_v55 = vadd.f32 %v995_v51, %v806_v52 }
 0x19d   : > { %v805_v56 = vadd.f32 %v995_v51, %v797_v54  ;;  %812 = vst [vmem:[%s378_s9 + $0x8] sm:$0xff] %v808_v55 }
 0x19f   : > { %811 = vst [vmem:[%s378_s9 + $0x10] sm:$0xff] %v805_v56 }
 0x1b1   : > { %v677_v60 = vpop.f32.mrb[4].mxu0 }
 0x1b2   : > { %v760_v61 = vsel %vm754_vm2, %v677_v60, %v755_v48  ;;  %v748_v62 = vpop.f32.mrb[4].mxu1  ;;  %v1075_v63 = vpop.f32.mrb[5].mxu0 }
 0x1b3   : > { %v786_v1 = vsel %vm780_vm3, %v760_v61, 0.0  ;;  %v770_v2 = vrot.slane %v748_v62, 1  ;;  %v1110_v3 = vpop.f32.mrb[5].mxu1 }
 0x1b4   : > { %v796_v4 = vadd.f32 %v786_v1, %v524_v22 }
 0x1b5   : > { %v772_v5 = vsel %vm763_vm1, %v765_v44, %v770_v2 }
 0x1b6   : > { %v804_v6 = vadd.f32 %v995_v51, %v796_v4  ;;  %v795_v7 = vsel %vm789_vm4, %v772_v5, 0.0 }
 0x1b7   : > { %v807_v10 = vadd.f32 %v795_v7, %v605_v45 }
 0x1b8   : > { %810 = vst [vmem:[%s378_s9] sm:$0xff] %v804_v6 }
 0x1b9   : > { %v809_v11 = vadd.f32 %v995_v51, %v807_v10 }
 0x1bb   : > { %813 = vst [vmem:[%s378_s9 + $0x18] sm:$0xff] %v809_v11 }
 0x1bc   : > { %1446 = shalt.err (!%p1443_p12)
}
 0x1bd   : > { %s1447_s5 = scalar_lea.hbm %s1894_s8, 512  ;;  %s1451_s20 = scalar_lea.hbm %s1993_s10, 1024 }
 0x1be   : > { %p1448_p0 = scmp.ne.s32.totalorder %s1894_s8, %s1447_s5  ;;  %p1452_p9 = scmp.lt.u32.totalorder %s1894_s8, %s1993_s10 }
 0x1bf   : > { %p1453_p4 = scmp.lt.u32.totalorder %s1451_s20, %s1447_s5  ;;  %p1455_p5 = scmp.lt.u32.totalorder %s1447_s5, %s1894_s8 }
 0x1c0   : > { %p1449_p11 = pnand %p1448_p0, %p1994_p10 }
 0x1c1   : > { %p1454_p2 = por %p1453_p4, %p1452_p9 }
 0x1c2   : > { %p1450_p1 = pneg %p1449_p11 }
 0x1c3   : > { %p1456_p13 = por %p1455_p5, %p1454_p2 }
 0x1c5   : > { %p1457_p7 = pnand %p1456_p13, %p1450_p1 }
 0x1c7   : > { %1460 = shalt.err (!%p1457_p7)
}
 0x1c8   : > { %s1537_s12 = smov 256   ;;  %s1538_s22 = smov 16  }
 0x1c9   : > { %1233 = dma.vmem_to_hbm [thread:$0]  (%p1994_p10), %s1889_s26, 512, %s1894_s8, %s815_s24, %s1537_s12, %s1537_s12, %s1538_s22  }
 0x1ca PF: > { %s1995_s23 = sld [smem:[#allocation15_spill]]  ;;  %s1996_s17 = sld [smem:[#allocation21_spill]] }
 0x1cb   : > { %s1997_s11 = sld [smem:[#allocation18_spill]] }
 0x1d0   : > { %s846_s30 = sand.u32 1, %s1995_s23   ;;  %p1998_p3 = scmp.ne.s32.totalorder %s1996_s17, 0 }
 0x1d1   : > { %p1999_p6 = scmp.ge.s32.totalorder %s1997_s11, 2  ;;  %s847_s9 = scalar_lea.sflag [#allocation4], %s846_s30 }
 0x1d3   : > { %p1250_p8 = pnand %p1999_p6, %p1998_p3 }
 0x1d5   : > { %1498 = dma.done.wait (!%p1250_p8), %s847_s9, 512  }
 0x1d6   : > { %1500 = vsyncadd (!%p1250_p8), %s847_s9, 4294966784  ;;  %s25_s23 = sadd.s32 1, %s1997_s11   ;;  %s2000_s14 = sld [smem:[#allocation16_spill]] }
 0x1d7   : > { %p22_p12 = scmp.ge.s32.totalorder %s25_s23, 4   ;;  %s2001_s20 = sld [smem:[#allocation20_spill]] }
 0x1d8   : > { %s2002_s21 = sld [smem:[#allocation17_spill]]  ;;  %s2003_s22 = sld [smem:[#allocation19_spill]] }
 0x1d9   : > { %s2004_s18 = smov %s1507_s19  ;;  %24 = sbr.rel (!%p22_p12) target bundleno = 12 (0xc), region = 113 }
 0x1dc   : > { %s2005_s19 = smov %s2000_s14 }
 0x1e0   :  { %852 = vsyncpa [#allocation3], 1 }
 0x1e1   :  { %854 = vsyncpa [#allocation3 + $0x1], 1 }
 0x1e2   :  { %855 = vsyncpa [#allocation6], 1 }
 0x1e3   :  { %857 = vsyncpa [#allocation6 + $0x1], 1 }
 0x1e4   :  { %858 = vsyncpa [#allocation9], 1 }
 0x1e5   :  { %859 = vsyncpa [#allocation4], 1 }
 0x1e6   :  { %861 = vsyncpa [#allocation4 + $0x1], 1 }

</bundles_post_ra>
